<compile_context>
chip_gen: v7x
topology: tpu7x:2x2x1
jax: 0.10.0
libtpu: 0.0.40
codegen_flags: <defaults>
</compile_context>

<pallas_src>
import functools

import jax
import jax.numpy as jnp
from jax.experimental import pallas as pl
from jax.experimental.pallas import tpu as pltpu


def _round_up(x, m):
    return ((x + m - 1) // m) * m


def _make_conv_kernel(kh, kw, dil, pad, c, c8, h, w, wp, ld):
    """One grid step: one image (NCHW, flattened HW) x one O-row block."""

    def kernel(x_ref, w_ref, b_ref, out_ref, xpad_ref, cols_ref):
        # x_ref   : (C, H*W)          one image, NCHW flat (free bitcast in HBM)
        # w_ref   : (o_block, KK*C8)  folded-K weights (taps x channels on K)
        # b_ref   : (o_block, 1)
        # out_ref : (o_block, OHd*WP) dense rows x padded-width cols, lanes=spatial
        # xpad_ref: (C, HP*WP + tail) zero-padded flat image (VMEM scratch)
        # cols_ref: (KK*C8, OHd*WP)   folded-K im2col slab (VMEM scratch)

        # ---- in-kernel zero padding: no wrapper-side jnp.pad HBM pass ----
        xpad_ref[...] = jnp.zeros_like(xpad_ref)
        if pad == 0:
            xpad_ref[:, 0:h * w] = x_ref[...]
        else:
            for r in range(h):                      # H static VMEM-local row copies
                dst = (pad + r) * wp + pad
                xpad_ref[:, dst:dst + w] = x_ref[:, r * w:(r + 1) * w]

        # ---- fold the KH*KW taps into the contraction dim ----
        # Tap (i, j) of the dense (stride-1) output is a *contiguous* slab of
        # the flattened padded image starting at i*dil*WP + j*dil, so the
        # im2col columns are built from KH*KW static slab copies: no per-tap
        # reshape / relayout at all.  Each tap lands on an 8-aligned sublane
        # offset (t * C8); unused channel rows stay zero (weights there are 0).
        if c8 != c:
            cols_ref[...] = jnp.zeros_like(cols_ref)
        t = 0
        for i in range(kh):
            for j in range(kw):
                off = i * dil * wp + j * dil
                cols_ref[t * c8:t * c8 + c, :] = xpad_ref[:, off:off + ld]
                t += 1

        # ---- single MXU matmul: (O_b, KK*C8) @ (KK*C8, OHd*WP), f32 acc ----
        acc = jnp.dot(w_ref[...], cols_ref[...],
                      preferred_element_type=jnp.float32)
        out_ref[...] = (acc + b_ref[...]).astype(out_ref.dtype)

    return kernel


@functools.partial(
    jax.jit,
    static_argnames=("dilation", "stride", "padding", "compute_dtype"))
def kh_cuda_conv_forward(x, weight, bias, *, dilation=1, stride=1, padding=0,
                         compute_dtype=jnp.float32):
    """Forward of KHCudaConv: conv2d(x, weight, bias, stride, padding, dilation)."""
    n, c, h, w = x.shape
    o, c2, kh, kw = weight.shape
    assert c == c2

    hp = h + 2 * padding
    wp = w + 2 * padding
    ohd = hp - dilation * (kh - 1)                    # dense (stride-1) output rows
    oh = (hp - dilation * (kh - 1) - 1) // stride + 1  # true strided output rows
    ow = (wp - dilation * (kw - 1) - 1) // stride + 1  # true strided output cols
    ld = ohd * wp                                     # lane extent of the GEMM
    pad_len = hp * wp + dilation * (kw - 1)           # flat scratch (+ tap overrun tail)

    c8 = _round_up(c, 8)                              # 8-aligned per-tap channel slot
    kkc = kh * kw * c8                                # folded contraction dim

    o8 = _round_up(o, 8)
    o_block = o8 if o8 <= 256 else 256                # O=8 -> a single row block
    o8 = _round_up(o8, o_block)

    # ---- layout glue (free or tiny): NCHW stays NCHW ----
    x_flat = x.reshape(n, c, h * w).astype(compute_dtype)   # trailing-dim reshape = bitcast
    # (O, C, KH, KW) -> (O, KH, KW, C8) -> (O8, KH*KW*C8); zero pad rows/channels
    wk = jnp.transpose(weight, (0, 2, 3, 1))
    wk = jnp.pad(wk, ((0, o8 - o), (0, 0), (0, 0), (0, c8 - c)))
    wk = wk.reshape(o8, kkc).astype(compute_dtype)
    b2 = jnp.pad(bias, (0, o8 - o)).reshape(o8, 1).astype(jnp.float32)

    kernel = _make_conv_kernel(kh, kw, dilation, padding, c, c8, h, w, wp, ld)

    flops = 2 * n * o8 * kkc * ld
    bytes_accessed = (x_flat.size * x_flat.dtype.itemsize
                      + wk.size * wk.dtype.itemsize
                      + b2.size * 4
                      + n * o8 * ld * 4)

    out = pl.pallas_call(
        kernel,
        out_shape=jax.ShapeDtypeStruct((n, o8, ld), jnp.float32),
        grid=(n, o8 // o_block),
        in_specs=[
            # one whole image per batch index, resident across the O axis
            pl.BlockSpec((None, c, h * w), lambda ni, oi: (ni, 0, 0)),
            pl.BlockSpec((o_block, kkc), lambda ni, oi: (oi, 0)),
            pl.BlockSpec((o_block, 1), lambda ni, oi: (oi, 0)),
        ],
        out_specs=pl.BlockSpec((None, o_block, ld), lambda ni, oi: (ni, oi, 0)),
        scratch_shapes=[
            pltpu.VMEM((c, pad_len), compute_dtype),     # padded flat image
            pltpu.VMEM((kkc, ld), compute_dtype),        # folded-K im2col columns
        ],
        compiler_params=pltpu.CompilerParams(
            dimension_semantics=("parallel", "parallel"),
            # Working set here is <1 MiB; for large images raise to 64-100 MiB
            # on v5e/v6e (128 MiB physical) and keep <= ~48 MiB on v7x (64 MiB).
            vmem_limit_bytes=32 * 1024 * 1024,
        ),
        cost_estimate=pl.CostEstimate(
            flops=flops, transcendentals=0, bytes_accessed=bytes_accessed),
    )(x_flat, wk, b2)

    # (N, O8, OHd*WP) -> free bitcast to (N, O8, OHd, WP) -> stride subsample
    # -> crop the padded-width garbage columns and any O padding -> exact NCHW.
    out = out.reshape(n, o8, ohd, wp)
    if stride > 1:
        out = out[:, :, ::stride, ::stride]
    return out[:, :o, :oh, :ow]


def _reference(x, weight, bias, *, dilation, stride, padding):
    return jax.lax.conv_general_dilated(
        x, weight,
        window_strides=(stride, stride),
        padding=[(padding, padding), (padding, padding)],
        rhs_dilation=(dilation, dilation),
        dimension_numbers=("NCHW", "OIHW", "NCHW"),
        precision=jax.lax.Precision.HIGHEST,
    ) + bias.reshape(1, -1, 1, 1)


if __name__ == "__main__":
    # KHCudaConv(input_chanel=4, output_chanel=8, kernel_size=3, padding=1)
    in_ch, out_ch, ksize = 4, 8, 3

    key = jax.random.PRNGKey(0)
    kx, kw_, kb = jax.random.split(key, 3)

    x = jax.random.normal(kx, (2, in_ch, 16, 16), dtype=jnp.float32)
    # deterministic init mirroring weight.data.uniform_(-0.1, 0.1)
    weight = jax.random.uniform(kw_, (out_ch, in_ch, ksize, ksize),
                                minval=-0.1, maxval=0.1, dtype=jnp.float32)
    bias = jax.random.uniform(kb, (out_ch,), minval=-0.1, maxval=0.1,
                              dtype=jnp.float32)

    # --- main config: dilation=1, stride=1, padding=1 (the module's usage) ---
    out = kh_cuda_conv_forward(x, weight, bias,
                               dilation=1, stride=1, padding=1)
    out = jax.block_until_ready(out)
    ref = _reference(x, weight, bias, dilation=1, stride=1, padding=1)
    assert out.shape == ref.shape == (2, out_ch, 16, 16), out.shape
    assert jnp.allclose(out, ref, atol=1e-3, rtol=1e-3), \
        float(jnp.max(jnp.abs(out - ref)))

    # --- bf16 MXU fast path (valid on v5e/v6e/v7x): f32 accumulation ---
    out_bf16 = kh_cuda_conv_forward(x, weight, bias,
                                    dilation=1, stride=1, padding=1,
                                    compute_dtype=jnp.bfloat16)
    out_bf16 = jax.block_until_ready(out_bf16)
    assert out_bf16.shape == ref.shape
    assert jnp.allclose(out_bf16, ref, atol=5e-2, rtol=5e-2), \
        float(jnp.max(jnp.abs(out_bf16 - ref)))

    # --- exercise padding=0 branch and stride>1 subsampling ---
    out_s2 = kh_cuda_conv_forward(x, weight, bias,
                                  dilation=1, stride=2, padding=0)
    out_s2 = jax.block_until_ready(out_s2)
    ref_s2 = _reference(x, weight, bias, dilation=1, stride=2, padding=0)
    assert out_s2.shape == ref_s2.shape == (2, out_ch, 7, 7), out_s2.shape
    assert jnp.allclose(out_s2, ref_s2, atol=1e-3, rtol=1e-3), \
        float(jnp.max(jnp.abs(out_s2 - ref_s2)))

    print("KERNEL_OK")
</pallas_src>

<mosaic_0001>
module attributes {stable_mosaic.version = 11 : i64} {
  func.func @kernel(%arg0: i32, %arg1: i32, %arg2: memref<1x4x256xf32, #tpu.memory_space<vmem>>, %arg3: memref<8x72xf32, #tpu.memory_space<vmem>>, %arg4: memref<8x1xf32, #tpu.memory_space<vmem>>, %arg5: memref<1x8x288xf32, #tpu.memory_space<vmem>>, %arg6: memref<4x326xf32, #tpu.memory_space<vmem>>, %arg7: memref<72x288xf32, #tpu.memory_space<vmem>>) attributes {dimension_semantics = [#tpu.dimension_semantics<parallel>, #tpu.dimension_semantics<parallel>], iteration_bounds = array<i64: 2, 1>, scalar_prefetch = 0 : i64, scratch_operands = 2 : i64, tpu.core_type = #tpu.core_type<tc>, window_params = [{transform_indices = @transform_0, window_bounds = array<i64: 1, 4, 256>}, {transform_indices = @transform_1, window_bounds = array<i64: 8, 72>}, {transform_indices = @transform_2, window_bounds = array<i64: 8, 1>}, {transform_indices = @transform_3, window_bounds = array<i64: 1, 8, 288>}]} {
    %cst = arith.constant 0.000000e+00 : f32
    %0 = vector.broadcast %cst : f32 to vector<4x326xf32>
    %c0 = arith.constant 0 : index
    %c0_0 = arith.constant 0 : index
    %1 = vector.load %arg6[%c0, %c0_0] : memref<4x326xf32, #tpu.memory_space<vmem>>, vector<4x326xf32>
    tpu.vector_store %arg6[%c0, %c0_0], %0 {strides = array<i32>} : memref<4x326xf32, #tpu.memory_space<vmem>>, vector<4x326xf32>,
    %c0_1 = arith.constant 0 : index
    %c0_2 = arith.constant 0 : index
    %c0_3 = arith.constant 0 : index
    %2 = vector.load %arg2[%c0_1, %c0_2, %c0_3] : memref<1x4x256xf32, #tpu.memory_space<vmem>>, vector<1x4x16xf32>
    %3 = vector.shape_cast %2 : vector<1x4x16xf32> to vector<4x16xf32>
    %c0_4 = arith.constant 0 : index
    %c19 = arith.constant 19 : index
    %4 = vector.load %arg6[%c0_4, %c19] : memref<4x326xf32, #tpu.memory_space<vmem>>, vector<4x16xf32>
    tpu.vector_store %arg6[%c0_4, %c19], %3 {strides = array<i32>} : memref<4x326xf32, #tpu.memory_space<vmem>>, vector<4x16xf32>,
    %c0_5 = arith.constant 0 : index
    %c0_6 = arith.constant 0 : index
    %c16 = arith.constant 16 : index
    %5 = vector.load %arg2[%c0_5, %c0_6, %c16] : memref<1x4x256xf32, #tpu.memory_space<vmem>>, vector<1x4x16xf32>
    %6 = vector.shape_cast %5 : vector<1x4x16xf32> to vector<4x16xf32>
    %c0_7 = arith.constant 0 : index
    %c37 = arith.constant 37 : index
    %7 = vector.load %arg6[%c0_7, %c37] : memref<4x326xf32, #tpu.memory_space<vmem>>, vector<4x16xf32>
    tpu.vector_store %arg6[%c0_7, %c37], %6 {strides = array<i32>} : memref<4x326xf32, #tpu.memory_space<vmem>>, vector<4x16xf32>,
    %c0_8 = arith.constant 0 : index
    %c0_9 = arith.constant 0 : index
    %c32 = arith.constant 32 : index
    %8 = vector.load %arg2[%c0_8, %c0_9, %c32] : memref<1x4x256xf32, #tpu.memory_space<vmem>>, vector<1x4x16xf32>
    %9 = vector.shape_cast %8 : vector<1x4x16xf32> to vector<4x16xf32>
    %c0_10 = arith.constant 0 : index
    %c55 = arith.constant 55 : index
    %10 = vector.load %arg6[%c0_10, %c55] : memref<4x326xf32, #tpu.memory_space<vmem>>, vector<4x16xf32>
    tpu.vector_store %arg6[%c0_10, %c55], %9 {strides = array<i32>} : memref<4x326xf32, #tpu.memory_space<vmem>>, vector<4x16xf32>,
    %c0_11 = arith.constant 0 : index
    %c0_12 = arith.constant 0 : index
    %c48 = arith.constant 48 : index
    %11 = vector.load %arg2[%c0_11, %c0_12, %c48] : memref<1x4x256xf32, #tpu.memory_space<vmem>>, vector<1x4x16xf32>
    %12 = vector.shape_cast %11 : vector<1x4x16xf32> to vector<4x16xf32>
    %c0_13 = arith.constant 0 : index
    %c73 = arith.constant 73 : index
    %13 = vector.load %arg6[%c0_13, %c73] : memref<4x326xf32, #tpu.memory_space<vmem>>, vector<4x16xf32>
    tpu.vector_store %arg6[%c0_13, %c73], %12 {strides = array<i32>} : memref<4x326xf32, #tpu.memory_space<vmem>>, vector<4x16xf32>,
    %c0_14 = arith.constant 0 : index
    %c0_15 = arith.constant 0 : index
    %c64 = arith.constant 64 : index
    %14 = vector.load %arg2[%c0_14, %c0_15, %c64] : memref<1x4x256xf32, #tpu.memory_space<vmem>>, vector<1x4x16xf32>
    %15 = vector.shape_cast %14 : vector<1x4x16xf32> to vector<4x16xf32>
    %c0_16 = arith.constant 0 : index
    %c91 = arith.constant 91 : index
    %16 = vector.load %arg6[%c0_16, %c91] : memref<4x326xf32, #tpu.memory_space<vmem>>, vector<4x16xf32>
    tpu.vector_store %arg6[%c0_16, %c91], %15 {strides = array<i32>} : memref<4x326xf32, #tpu.memory_space<vmem>>, vector<4x16xf32>,
    %c0_17 = arith.constant 0 : index
    %c0_18 = arith.constant 0 : index
    %c80 = arith.constant 80 : index
    %17 = vector.load %arg2[%c0_17, %c0_18, %c80] : memref<1x4x256xf32, #tpu.memory_space<vmem>>, vector<1x4x16xf32>
    %18 = vector.shape_cast %17 : vector<1x4x16xf32> to vector<4x16xf32>
    %c0_19 = arith.constant 0 : index
    %c109 = arith.constant 109 : index
    %19 = vector.load %arg6[%c0_19, %c109] : memref<4x326xf32, #tpu.memory_space<vmem>>, vector<4x16xf32>
    tpu.vector_store %arg6[%c0_19, %c109], %18 {strides = array<i32>} : memref<4x326xf32, #tpu.memory_space<vmem>>, vector<4x16xf32>,
    %c0_20 = arith.constant 0 : index
    %c0_21 = arith.constant 0 : index
    %c96 = arith.constant 96 : index
    %20 = vector.load %arg2[%c0_20, %c0_21, %c96] : memref<1x4x256xf32, #tpu.memory_space<vmem>>, vector<1x4x16xf32>
    %21 = vector.shape_cast %20 : vector<1x4x16xf32> to vector<4x16xf32>
    %c0_22 = arith.constant 0 : index
    %c127 = arith.constant 127 : index
    %22 = vector.load %arg6[%c0_22, %c127] : memref<4x326xf32, #tpu.memory_space<vmem>>, vector<4x16xf32>
    tpu.vector_store %arg6[%c0_22, %c127], %21 {strides = array<i32>} : memref<4x326xf32, #tpu.memory_space<vmem>>, vector<4x16xf32>,
    %c0_23 = arith.constant 0 : index
    %c0_24 = arith.constant 0 : index
    %c112 = arith.constant 112 : index
    %23 = vector.load %arg2[%c0_23, %c0_24, %c112] : memref<1x4x256xf32, #tpu.memory_space<vmem>>, vector<1x4x16xf32>
    %24 = vector.shape_cast %23 : vector<1x4x16xf32> to vector<4x16xf32>
    %c0_25 = arith.constant 0 : index
    %c145 = arith.constant 145 : index
    %25 = vector.load %arg6[%c0_25, %c145] : memref<4x326xf32, #tpu.memory_space<vmem>>, vector<4x16xf32>
    tpu.vector_store %arg6[%c0_25, %c145], %24 {strides = array<i32>} : memref<4x326xf32, #tpu.memory_space<vmem>>, vector<4x16xf32>,
    %c0_26 = arith.constant 0 : index
    %c0_27 = arith.constant 0 : index
    %c128 = arith.constant 128 : index
    %26 = vector.load %arg2[%c0_26, %c0_27, %c128] : memref<1x4x256xf32, #tpu.memory_space<vmem>>, vector<1x4x16xf32>
    %27 = vector.shape_cast %26 : vector<1x4x16xf32> to vector<4x16xf32>
    %c0_28 = arith.constant 0 : index
    %c163 = arith.constant 163 : index
    %28 = vector.load %arg6[%c0_28, %c163] : memref<4x326xf32, #tpu.memory_space<vmem>>, vector<4x16xf32>
    tpu.vector_store %arg6[%c0_28, %c163], %27 {strides = array<i32>} : memref<4x326xf32, #tpu.memory_space<vmem>>, vector<4x16xf32>,
    %c0_29 = arith.constant 0 : index
    %c0_30 = arith.constant 0 : index
    %c144 = arith.constant 144 : index
    %29 = vector.load %arg2[%c0_29, %c0_30, %c144] : memref<1x4x256xf32, #tpu.memory_space<vmem>>, vector<1x4x16xf32>
    %30 = vector.shape_cast %29 : vector<1x4x16xf32> to vector<4x16xf32>
    %c0_31 = arith.constant 0 : index
    %c181 = arith.constant 181 : index
    %31 = vector.load %arg6[%c0_31, %c181] : memref<4x326xf32, #tpu.memory_space<vmem>>, vector<4x16xf32>
    tpu.vector_store %arg6[%c0_31, %c181], %30 {strides = array<i32>} : memref<4x326xf32, #tpu.memory_space<vmem>>, vector<4x16xf32>,
    %c0_32 = arith.constant 0 : index
    %c0_33 = arith.constant 0 : index
    %c160 = arith.constant 160 : index
    %32 = vector.load %arg2[%c0_32, %c0_33, %c160] : memref<1x4x256xf32, #tpu.memory_space<vmem>>, vector<1x4x16xf32>
    %33 = vector.shape_cast %32 : vector<1x4x16xf32> to vector<4x16xf32>
    %c0_34 = arith.constant 0 : index
    %c199 = arith.constant 199 : index
    %34 = vector.load %arg6[%c0_34, %c199] : memref<4x326xf32, #tpu.memory_space<vmem>>, vector<4x16xf32>
    tpu.vector_store %arg6[%c0_34, %c199], %33 {strides = array<i32>} : memref<4x326xf32, #tpu.memory_space<vmem>>, vector<4x16xf32>,
    %c0_35 = arith.constant 0 : index
    %c0_36 = arith.constant 0 : index
    %c176 = arith.constant 176 : index
    %35 = vector.load %arg2[%c0_35, %c0_36, %c176] : memref<1x4x256xf32, #tpu.memory_space<vmem>>, vector<1x4x16xf32>
    %36 = vector.shape_cast %35 : vector<1x4x16xf32> to vector<4x16xf32>
    %c0_37 = arith.constant 0 : index
    %c217 = arith.constant 217 : index
    %37 = vector.load %arg6[%c0_37, %c217] : memref<4x326xf32, #tpu.memory_space<vmem>>, vector<4x16xf32>
    tpu.vector_store %arg6[%c0_37, %c217], %36 {strides = array<i32>} : memref<4x326xf32, #tpu.memory_space<vmem>>, vector<4x16xf32>,
    %c0_38 = arith.constant 0 : index
    %c0_39 = arith.constant 0 : index
    %c192 = arith.constant 192 : index
    %38 = vector.load %arg2[%c0_38, %c0_39, %c192] : memref<1x4x256xf32, #tpu.memory_space<vmem>>, vector<1x4x16xf32>
    %39 = vector.shape_cast %38 : vector<1x4x16xf32> to vector<4x16xf32>
    %c0_40 = arith.constant 0 : index
    %c235 = arith.constant 235 : index
    %40 = vector.load %arg6[%c0_40, %c235] : memref<4x326xf32, #tpu.memory_space<vmem>>, vector<4x16xf32>
    tpu.vector_store %arg6[%c0_40, %c235], %39 {strides = array<i32>} : memref<4x326xf32, #tpu.memory_space<vmem>>, vector<4x16xf32>,
    %c0_41 = arith.constant 0 : index
    %c0_42 = arith.constant 0 : index
    %c208 = arith.constant 208 : index
    %41 = vector.load %arg2[%c0_41, %c0_42, %c208] : memref<1x4x256xf32, #tpu.memory_space<vmem>>, vector<1x4x16xf32>
    %42 = vector.shape_cast %41 : vector<1x4x16xf32> to vector<4x16xf32>
    %c0_43 = arith.constant 0 : index
    %c253 = arith.constant 253 : index
    %43 = vector.load %arg6[%c0_43, %c253] : memref<4x326xf32, #tpu.memory_space<vmem>>, vector<4x16xf32>
    tpu.vector_store %arg6[%c0_43, %c253], %42 {strides = array<i32>} : memref<4x326xf32, #tpu.memory_space<vmem>>, vector<4x16xf32>,
    %c0_44 = arith.constant 0 : index
    %c0_45 = arith.constant 0 : index
    %c224 = arith.constant 224 : index
    %44 = vector.load %arg2[%c0_44, %c0_45, %c224] : memref<1x4x256xf32, #tpu.memory_space<vmem>>, vector<1x4x16xf32>
    %45 = vector.shape_cast %44 : vector<1x4x16xf32> to vector<4x16xf32>
    %c0_46 = arith.constant 0 : index
    %c271 = arith.constant 271 : index
    %46 = vector.load %arg6[%c0_46, %c271] : memref<4x326xf32, #tpu.memory_space<vmem>>, vector<4x16xf32>
    tpu.vector_store %arg6[%c0_46, %c271], %45 {strides = array<i32>} : memref<4x326xf32, #tpu.memory_space<vmem>>, vector<4x16xf32>,
    %c0_47 = arith.constant 0 : index
    %c0_48 = arith.constant 0 : index
    %c240 = arith.constant 240 : index
    %47 = vector.load %arg2[%c0_47, %c0_48, %c240] : memref<1x4x256xf32, #tpu.memory_space<vmem>>, vector<1x4x16xf32>
    %48 = vector.shape_cast %47 : vector<1x4x16xf32> to vector<4x16xf32>
    %c0_49 = arith.constant 0 : index
    %c289 = arith.constant 289 : index
    %49 = vector.load %arg6[%c0_49, %c289] : memref<4x326xf32, #tpu.memory_space<vmem>>, vector<4x16xf32>
    tpu.vector_store %arg6[%c0_49, %c289], %48 {strides = array<i32>} : memref<4x326xf32, #tpu.memory_space<vmem>>, vector<4x16xf32>,
    %cst_50 = arith.constant 0.000000e+00 : f32
    %50 = vector.broadcast %cst_50 : f32 to vector<72x288xf32>
    %c0_51 = arith.constant 0 : index
    %c0_52 = arith.constant 0 : index
    %51 = vector.load %arg7[%c0_51, %c0_52] : memref<72x288xf32, #tpu.memory_space<vmem>>, vector<72x288xf32>
    tpu.vector_store %arg7[%c0_51, %c0_52], %50 {strides = array<i32>} : memref<72x288xf32, #tpu.memory_space<vmem>>, vector<72x288xf32>,
    %c0_53 = arith.constant 0 : index
    %c0_54 = arith.constant 0 : index
    %52 = vector.load %arg6[%c0_53, %c0_54] : memref<4x326xf32, #tpu.memory_space<vmem>>, vector<4x288xf32>
    %c0_55 = arith.constant 0 : index
    %c0_56 = arith.constant 0 : index
    %53 = vector.load %arg7[%c0_55, %c0_56] : memref<72x288xf32, #tpu.memory_space<vmem>>, vector<4x288xf32>
    tpu.vector_store %arg7[%c0_55, %c0_56], %52 {strides = array<i32>} : memref<72x288xf32, #tpu.memory_space<vmem>>, vector<4x288xf32>,
    %c0_57 = arith.constant 0 : index
    %c1 = arith.constant 1 : index
    %54 = vector.load %arg6[%c0_57, %c1] : memref<4x326xf32, #tpu.memory_space<vmem>>, vector<4x288xf32>
    %c8 = arith.constant 8 : index
    %c0_58 = arith.constant 0 : index
    %55 = vector.load %arg7[%c8, %c0_58] : memref<72x288xf32, #tpu.memory_space<vmem>>, vector<4x288xf32>
    tpu.vector_store %arg7[%c8, %c0_58], %54 {strides = array<i32>} : memref<72x288xf32, #tpu.memory_space<vmem>>, vector<4x288xf32>,
    %c0_59 = arith.constant 0 : index
    %c2 = arith.constant 2 : index
    %56 = vector.load %arg6[%c0_59, %c2] : memref<4x326xf32, #tpu.memory_space<vmem>>, vector<4x288xf32>
    %c16_60 = arith.constant 16 : index
    %c0_61 = arith.constant 0 : index
    %57 = vector.load %arg7[%c16_60, %c0_61] : memref<72x288xf32, #tpu.memory_space<vmem>>, vector<4x288xf32>
    tpu.vector_store %arg7[%c16_60, %c0_61], %56 {strides = array<i32>} : memref<72x288xf32, #tpu.memory_space<vmem>>, vector<4x288xf32>,
    %c0_62 = arith.constant 0 : index
    %c18 = arith.constant 18 : index
    %58 = vector.load %arg6[%c0_62, %c18] : memref<4x326xf32, #tpu.memory_space<vmem>>, vector<4x288xf32>
    %c24 = arith.constant 24 : index
    %c0_63 = arith.constant 0 : index
    %59 = vector.load %arg7[%c24, %c0_63] : memref<72x288xf32, #tpu.memory_space<vmem>>, vector<4x288xf32>
    tpu.vector_store %arg7[%c24, %c0_63], %58 {strides = array<i32>} : memref<72x288xf32, #tpu.memory_space<vmem>>, vector<4x288xf32>,
    %c0_64 = arith.constant 0 : index
    %c19_65 = arith.constant 19 : index
    %60 = vector.load %arg6[%c0_64, %c19_65] : memref<4x326xf32, #tpu.memory_space<vmem>>, vector<4x288xf32>
    %c32_66 = arith.constant 32 : index
    %c0_67 = arith.constant 0 : index
    %61 = vector.load %arg7[%c32_66, %c0_67] : memref<72x288xf32, #tpu.memory_space<vmem>>, vector<4x288xf32>
    tpu.vector_store %arg7[%c32_66, %c0_67], %60 {strides = array<i32>} : memref<72x288xf32, #tpu.memory_space<vmem>>, vector<4x288xf32>,
    %c0_68 = arith.constant 0 : index
    %c20 = arith.constant 20 : index
    %62 = vector.load %arg6[%c0_68, %c20] : memref<4x326xf32, #tpu.memory_space<vmem>>, vector<4x288xf32>
    %c40 = arith.constant 40 : index
    %c0_69 = arith.constant 0 : index
    %63 = vector.load %arg7[%c40, %c0_69] : memref<72x288xf32, #tpu.memory_space<vmem>>, vector<4x288xf32>
    tpu.vector_store %arg7[%c40, %c0_69], %62 {strides = array<i32>} : memref<72x288xf32, #tpu.memory_space<vmem>>, vector<4x288xf32>,
    %c0_70 = arith.constant 0 : index
    %c36 = arith.constant 36 : index
    %64 = vector.load %arg6[%c0_70, %c36] : memref<4x326xf32, #tpu.memory_space<vmem>>, vector<4x288xf32>
    %c48_71 = arith.constant 48 : index
    %c0_72 = arith.constant 0 : index
    %65 = vector.load %arg7[%c48_71, %c0_72] : memref<72x288xf32, #tpu.memory_space<vmem>>, vector<4x288xf32>
    tpu.vector_store %arg7[%c48_71, %c0_72], %64 {strides = array<i32>} : memref<72x288xf32, #tpu.memory_space<vmem>>, vector<4x288xf32>,
    %c0_73 = arith.constant 0 : index
    %c37_74 = arith.constant 37 : index
    %66 = vector.load %arg6[%c0_73, %c37_74] : memref<4x326xf32, #tpu.memory_space<vmem>>, vector<4x288xf32>
    %c56 = arith.constant 56 : index
    %c0_75 = arith.constant 0 : index
    %67 = vector.load %arg7[%c56, %c0_75] : memref<72x288xf32, #tpu.memory_space<vmem>>, vector<4x288xf32>
    tpu.vector_store %arg7[%c56, %c0_75], %66 {strides = array<i32>} : memref<72x288xf32, #tpu.memory_space<vmem>>, vector<4x288xf32>,
    %c0_76 = arith.constant 0 : index
    %c38 = arith.constant 38 : index
    %68 = vector.load %arg6[%c0_76, %c38] : memref<4x326xf32, #tpu.memory_space<vmem>>, vector<4x288xf32>
    %c64_77 = arith.constant 64 : index
    %c0_78 = arith.constant 0 : index
    %69 = vector.load %arg7[%c64_77, %c0_78] : memref<72x288xf32, #tpu.memory_space<vmem>>, vector<4x288xf32>
    tpu.vector_store %arg7[%c64_77, %c0_78], %68 {strides = array<i32>} : memref<72x288xf32, #tpu.memory_space<vmem>>, vector<4x288xf32>,
    %c0_79 = arith.constant 0 : index
    %c0_80 = arith.constant 0 : index
    %70 = vector.load %arg3[%c0_79, %c0_80] : memref<8x72xf32, #tpu.memory_space<vmem>>, vector<8x72xf32>
    %c0_81 = arith.constant 0 : index
    %c0_82 = arith.constant 0 : index
    %71 = vector.load %arg7[%c0_81, %c0_82] : memref<72x288xf32, #tpu.memory_space<vmem>>, vector<72x288xf32>
    %cst_83 = arith.constant dense<0.000000e+00> : vector<8x288xf32>
    %72 = tpu.matmul %70, %71, %cst_83 {dimension_numbers = #tpu.dot_dimension_numbers<[1], [0], [0], [1], [0, 0, 1, 1], [], []>} : vector<8x72xf32>, vector<72x288xf32>, vector<8x288xf32> -> vector<8x288xf32>
    %c0_84 = arith.constant 0 : index
    %c0_85 = arith.constant 0 : index
    %73 = vector.load %arg4[%c0_84, %c0_85] : memref<8x1xf32, #tpu.memory_space<vmem>>, vector<8x1xf32>
    %74 = vector.broadcast %73 : vector<8x1xf32> to vector<8x288xf32>
    %75 = arith.addf %72, %74 : vector<8x288xf32>
    %c0_86 = arith.constant 0 : index
    %c0_87 = arith.constant 0 : index
    %c0_88 = arith.constant 0 : index
    %76 = vector.load %arg5[%c0_86, %c0_87, %c0_88] : memref<1x8x288xf32, #tpu.memory_space<vmem>>, vector<1x8x288xf32>
    %77 = vector.shape_cast %76 : vector<1x8x288xf32> to vector<8x288xf32>
    %78 = vector.shape_cast %75 : vector<8x288xf32> to vector<1x8x288xf32>
    tpu.vector_store %arg5[%c0_86, %c0_87, %c0_88], %78 {strides = array<i32>} : memref<1x8x288xf32, #tpu.memory_space<vmem>>, vector<1x8x288xf32>,
    return
  }
  func.func @transform_0(%arg0: i32, %arg1: i32) -> (i32, i32, i32) {
    %c0_i32 = arith.constant 0 : i32
    %c0_i32_0 = arith.constant 0 : i32
    %c0_i32_1 = arith.constant 0 : i32
    return %arg0, %c0_i32, %c0_i32_0 : i32, i32, i32
  }
  func.func @transform_1(%arg0: i32, %arg1: i32) -> (i32, i32) {
    %c0_i32 = arith.constant 0 : i32
    %c0_i32_0 = arith.constant 0 : i32
    return %arg1, %c0_i32 : i32, i32
  }
  func.func @transform_2(%arg0: i32, %arg1: i32) -> (i32, i32) {
    %c0_i32 = arith.constant 0 : i32
    %c0_i32_0 = arith.constant 0 : i32
    return %arg1, %c0_i32 : i32, i32
  }
  func.func @transform_3(%arg0: i32, %arg1: i32) -> (i32, i32, i32) {
    %c0_i32 = arith.constant 0 : i32
    %c0_i32_0 = arith.constant 0 : i32
    return %arg0, %arg1, %c0_i32 : i32, i32, i32
  }
}

</mosaic_0001>

<bundles_post_ra>
// kernel: kh_cuda_conv_forward.1
= control target key start
LH: loop header
LB: loop body
LE: loop exit
PB: predicated region body
PF: predicated region fallthrough
CT: control target
= control target key end

     0   :  { %s1046_s12 = smov 0   ;;  %s1048_s13 = smov 0   ;;  %s1173_s0 = inlined_call_operand.vmem [shape: f32[2,4,256], index: 0, kind: input, shape index: {}]   ;;  %s1174_s1 = inlined_call_operand.vmem [shape: f32[8,72], index: 1, kind: input, shape index: {}]   ;;  %s1175_s2 = inlined_call_operand.vmem [shape: f32[8,1], index: 2, kind: input, shape index: {}]   ;;  %s1176_s3 = inlined_call_operand.vmem [shape: f32[2,8,288], index: 3, kind: output, shape index: {}]  }
   0x1   :  { %s1050_s14 = smov 0  }
   0x2 LB: > { %s25_s15 = sadd.s32 1, %s992_s13  ;;  %p851_p0 = scmp.ge.s32.totalorder %s996_s14, 1  ;;  %s996_s14 = sphi %s1050_s14, %s13_s14   ;;  %s992_s13 = sphi %s1048_s13, %s1178_s13   ;;  %s988_s12 = sphi %s1046_s12, %s1177_s12  }
   0x3   : > { %p27_p1 = scmp.ge.s32.totalorder %s25_s15, 2  ;;  %p169_p2 = scmp.lt.s32.totalorder %s996_s14, 3 }
   0x5   : > { %s1180_s15 = smov (%p27_p1, %s25_s15), 0  ;;  %p170_p3 = pnand %p851_p0, %p169_p2 }
   0x6   : > { %p205_p4 = scmp.lt.s32.totalorder (!%p170_p3), %s988_s12, 1  ;;  %v998_v0 = vmov (!%p170_p3), 0.0   ;;  %s999_s20 = smov (!%p170_p3), 23   ;;  %vm228_vm0 = vcmask (!%p170_p3), 568320   ;;  %vm354_vm1 = vcmask (!%p170_p3), 261120   ;;  %vm235_vm2 = vcmask (!%p170_p3), 281752  }
   0x7   : > { %173 = sbr.rel (%p170_p3) target bundleno = 555 (0x22b), region = 32  ;;  %227 = vst [vmem:[#allocation2] sm:$0xff] (!%p170_p3), %v998_v0  ;;  %352 = vst [vmem:[#allocation3] sm:$0xff] (!%p170_p3), %v998_v0  ;;  %651 = vmatprep.mubr.f32.mxu0 (!%p170_p3), %v998_v0  ;;  %s1000_s21 = smov (!%p170_p3), 19   ;;  %vm242_vm3 = vcmask (!%p170_p3), 429352   ;;  %vm249_vm4 = vcmask (!%p170_p3), 576952  }
   0x8   : > { %353 = vst [vmem:[#allocation3 + $0x8] sm:$0xff] (!%p170_p3), %v998_v0  ;;  %356 = vst [vmem:[#allocation3 + $0x18] sm:$0xff] (!%p170_p3), %v998_v0  ;;  %s1001_s22 = smov (!%p170_p3), 25   ;;  %s1002_s23 = smov (!%p170_p3), 21   ;;  %vm256_vm5 = vcmask (!%p170_p3), 724552   ;;  %vm263_vm6 = vcmask (!%p170_p3), 872152  }
   0x9   : > { %357 = vst [vmem:[#allocation3 + $0x20] sm:$0xff] (!%p170_p3), %v998_v0  ;;  %359 = vst [vmem:[#allocation3 + $0x30] sm:$0xff] (!%p170_p3), %v998_v0  ;;  %s1003_s24 = smov (!%p170_p3), 27   ;;  %s1004_s25 = smov (!%p170_p3), 31   ;;  %vm280_vm7 = vcmask (!%p170_p3), 1044472   ;;  %vm281_vm8 = vcmask (!%p170_p3), 121860  }
   0xa   : > { %360 = vst [vmem:[#allocation3 + $0x38] sm:$0xff] (!%p170_p3), %v998_v0  ;;  %362 = vst [vmem:[#allocation3 + $0x48] sm:$0xff] (!%p170_p3), %v998_v0  ;;  %s1005_s26 = smov (!%p170_p3), 33   ;;  %s1006_s27 = smov (!%p170_p3), 29   ;;  %vm277_vm9 = vcmask (!%p170_p3), 252928   ;;  %vm270_vm10 = vcmask (!%p170_p3), 1019752  }
   0xb   : > { %363 = vst [vmem:[#allocation3 + $0x50] sm:$0xff] (!%p170_p3), %v998_v0  ;;  %365 = vst [vmem:[#allocation3 + $0x60] sm:$0xff] (!%p170_p3), %v998_v0  ;;  %s1007_s28 = smov (!%p170_p3), 37   ;;  %s1008_s29 = smov (!%p170_p3), 35   ;;  %vm289_vm12 = vcmask (!%p170_p3), 265352   ;;  %vm296_vm13 = vcmask (!%p170_p3), 412952  }
   0xc   : > { %366 = vst [vmem:[#allocation3 + $0x68] sm:$0xff] (!%p170_p3), %v998_v0  ;;  %368 = vst [vmem:[#allocation3 + $0x78] sm:$0xff] (!%p170_p3), %v998_v0  ;;  %s1009_s30 = smov (!%p170_p3), 45   ;;  %s1010_s4 = smov (!%p170_p3), 39   ;;  %vm303_vm14 = vcmask (!%p170_p3), 560552   ;;  %vm310_vm15 = vcmask (!%p170_p3), 708152  }
   0xd   : > { %369 = vst [vmem:[#allocation3 + $0x80] sm:$0xff] (!%p170_p3), %v998_v0  ;;  %371 = vst [vmem:[#allocation3 + $0x90] sm:$0xff] (!%p170_p3), %v998_v0  ;;  %s1011_s5 = smov (!%p170_p3), 41   ;;  %s1012_s6 = smov (!%p170_p3), 43   ;;  %v1021_v41 = vmov (!%p170_p3), 0.0|0.0   ;;  %v1025_v49 = vmov (!%p170_p3), 0  }
   0xe   : > { %372 = vst [vmem:[#allocation3 + $0x98] sm:$0xff] %v998_v0  ;;  %374 = vst [vmem:[#allocation3 + $0xa8] sm:$0xff] %v998_v0  ;;  %s1182_s12 = smov (!%p205_p4, %s988_s12), 1  ;;  %s1013_s7 = smov 47   ;;  %907 = vmatprep.subr.bf16.mxu1 %v1021_v41  ;;  %972 = vset.pattern.permute.xlu0 %v1025_v49  ;;  %v577_v50 = vld [vmem:[%s1175_s2] sm:$0xff] }
   0xf   : > { %375 = vst [vmem:[#allocation3 + $0xb0] sm:$0xff] %v998_v0  ;;  %377 = vst [vmem:[#allocation3 + $0xc0] sm:$0xff] %v998_v0  ;;  %s859_s16 = sshll.u32 %s1182_s12, 3  ;;  %s1014_s8 = smov 49  }
  0x10   : > { %378 = vst [vmem:[#allocation3 + $0xc8] sm:$0xff] %v998_v0  ;;  %s1096_s19 = scalar_lea.vmem %s1173_s0, %s859_s16  ;;  %229 = vst.msk [vmem:[#allocation2 + $0x8] sm:$0xf] %vm228_vm0, %v998_v0  ;;  %vm334_vm0 = vcmask 1044456   ;;  %s1015_s9 = smov 126  }
  0x11   : > { %v244_v1 = vld [vmem:[%s1096_s19] sm:$0xf]  ;;  %v298_v9 = vld [vmem:[%s1096_s19 + $0x4] sm:$0xf]  ;;  %358 = vst.msk [vmem:[#allocation3 + $0x28] sm:$0xff] %vm354_vm1, %v998_v0  ;;  %355 = vst.msk [vmem:[#allocation3 + $0x10] sm:$0xff] %vm354_vm1, %v998_v0 }
  0x12   : > { %v230_v2 = vld [vmem:[%s1096_s19] sm:$0xf]  ;;  %246 = vrot.lane.b32.xlu1 %v244_v1, %s999_s20  ;;  %v291_v10 = vld [vmem:[%s1096_s19 + $0x4] sm:$0xf]  ;;  %361 = vst.msk [vmem:[#allocation3 + $0x40] sm:$0xff] %vm354_vm1, %v998_v0  ;;  %364 = vst.msk [vmem:[#allocation3 + $0x58] sm:$0xff] %vm354_vm1, %v998_v0 }
  0x13   : > { %232 = vrot.lane.b32.xlu0 %v230_v2, %s1000_s21  ;;  %v251_v3 = vld [vmem:[%s1096_s19] sm:$0xf]  ;;  %v326_v11 = vld [vmem:[%s1096_s19 + $0x4] sm:$0xf]  ;;  %367 = vst.msk [vmem:[#allocation3 + $0x70] sm:$0xff] %vm354_vm1, %v998_v0  ;;  %370 = vst.msk [vmem:[#allocation3 + $0x88] sm:$0xff] %vm354_vm1, %v998_v0 }
  0x14   : > { %v237_v4 = vld [vmem:[%s1096_s19] sm:$0xf]  ;;  %v305_v12 = vld [vmem:[%s1096_s19 + $0x4] sm:$0xf]  ;;  %373 = vst.msk [vmem:[#allocation3 + $0xa0] sm:$0xff] %vm354_vm1, %v998_v0  ;;  %376 = vst.msk [vmem:[#allocation3 + $0xb8] sm:$0xff] %vm354_vm1, %v998_v0 }
  0x15   : > { %v258_v5 = vld [vmem:[%s1096_s19] sm:$0xf]  ;;  %v312_v13 = vld [vmem:[%s1096_s19 + $0x4] sm:$0xf]  ;;  %379 = vst.msk [vmem:[#allocation3 + $0xd0] sm:$0xff] %vm354_vm1, %v998_v0  ;;  %vm282_vm11 = vmor %vm281_vm8, %vm280_vm7  ;;  %vm343_vm7 = vcmask 248952  }
  0x16   : > { %253 = vrot.lane.b32.xlu1 %v251_v3, %s1001_s22  ;;  %v272_v6 = vld [vmem:[%s1096_s19] sm:$0xf]  ;;  %v319_v14 = vld [vmem:[%s1096_s19 + $0x4] sm:$0xf]  ;;  %vm350_vm8 = vcmask 396552   ;;  %s1016_s10 = smov 127  }
  0x17   : > { %239 = vrot.lane.b32.xlu0 %v237_v4, %s1002_s23  ;;  %v284_v7 = vld [vmem:[%s1096_s19] sm:$0xf]  ;;  %v338_v15 = vld [vmem:[%s1096_s19 + $0x4] sm:$0xf]  ;;  %s1017_s11 = smov 109   ;;  %s1018_s16 = smov 110  }
  0x18   : > { %v265_v8 = vld [vmem:[%s1096_s19] sm:$0xf]  ;;  %v345_v16 = vld [vmem:[%s1096_s19 + $0x4] sm:$0xf]  ;;  %s1019_s17 = smov 92   ;;  %s1020_s18 = smov 108  }
  0x19   : > { %s1022_s19 = smov 91   ;;  %s1023_s20 = smov 90  }
  0x1a   : > { %260 = vrot.lane.b32.xlu1 %v258_v5, %s1003_s24 }
  0x1b   : > { %274 = vrot.lane.b32.xlu0 %v272_v6, %s1004_s25  ;;  %s919_s25 = smul.u32 24, %s1182_s12 }
  0x1e   : > { %286 = vrot.lane.b32.xlu1 %v284_v7, %s1005_s26 }
  0x1f   : > { %267 = vrot.lane.b32.xlu0 %v265_v8, %s1006_s27 }
  0x22   : > { %300 = vrot.lane.b32.xlu1 %v298_v9, %s1007_s28  ;;  %s226_s28 = scalar_lea.vmem %s1176_s3, %s919_s25 }
  0x23   : > { %293 = vrot.lane.b32.xlu0 %v291_v10, %s1008_s29 }
  0x26   : > { %328 = vrot.lane.b32.xlu1 %v326_v11, %s1009_s30 }
  0x27   : > { %307 = vrot.lane.b32.xlu0 %v305_v12, %s1010_s4 }
  0x2a   : > { %321 = vrot.lane.b32.xlu1 %v319_v14, %s1012_s6 }
  0x2b   : > { %314 = vrot.lane.b32.xlu0 %v312_v13, %s1011_s5 }
  0x2e   : > { %347 = vrot.lane.b32.xlu1 %v345_v16, %s1014_s8 }
  0x2f   : > { %340 = vrot.lane.b32.xlu0 %v338_v15, %s1013_s7 }
  0x84   : > { %v247_v17 = vpop.permute.xlu1 %246 }
  0x85   : > { %v233_v18 = vpop.permute.xlu0 %232 }
  0x86   : > { %236 = vst.msk [vmem:[#allocation2] sm:$0xf] %vm235_vm2, %v233_v18  ;;  %vm335_vm2 = vcmask 105476  }
  0x88   : > { %v254_v19 = vpop.permute.xlu1 %253 }
  0x89   : > { %v240_v20 = vpop.permute.xlu0 %239 }
  0x8a   : > { %243 = vst.msk [vmem:[#allocation2] sm:$0xf] %vm242_vm3, %v240_v20  ;;  %vm317_vm3 = vcmask 855752  }
  0x8b   : > { %250 = vst.msk [vmem:[#allocation2] sm:$0xf] %vm249_vm4, %v247_v17  ;;  %vm331_vm4 = vcmask 367616  }
  0x8c   : > { %257 = vst.msk [vmem:[#allocation2] sm:$0xf] %vm256_vm5, %v254_v19  ;;  %v261_v21 = vpop.permute.xlu1 %260  ;;  %vm324_vm5 = vcmask 1003352  }
  0x8d   : > { %v275_v22 = vpop.permute.xlu0 %274  ;;  %264 = vst.msk [vmem:[#allocation2] sm:$0xf] %vm263_vm6, %v261_v21  ;;  %vm336_vm6 = vmor %vm335_vm2, %vm334_vm0  ;;  %vm500_vm0 = vcmask 752640   ;;  %vm520_vm2 = vcmask 744448  }
  0x8e   : > { %v276_v23 = vrot.slane %v275_v22, 4 }
  0x90   : > { %v287_v24 = vpop.permute.xlu1 %286  ;;  %v278_v26 = vsel %vm277_vm9, %v276_v23, %v275_v22  ;;  %vm387_vm9 = vcmask 257024  }
  0x91   : > { %v268_v25 = vpop.permute.xlu0 %267 }
  0x92   : > { %271 = vst.msk [vmem:[#allocation2] sm:$0xf] %vm270_vm10, %v268_v25  ;;  %vm1024_vm10 = vmmov 0  }
  0x93   : > { %283 = vst.msk [vmem:[#allocation2] sm:$0xff] %vm282_vm11, %v278_v26  ;;  %888 = vmatprep.mubr.msk.f32.mxu1 %vm1024_vm10, %v998_v0  ;;  %vm400_vm11 = vcmask 1039360  }
  0x94   : > { %290 = vst.msk [vmem:[#allocation2 + $0x4] sm:$0xf] %vm289_vm12, %v287_v24  ;;  %v301_v27 = vpop.permute.xlu1 %300  ;;  %vm420_vm12 = vcmask 1031168  }
  0x95   : > { %v294_v28 = vpop.permute.xlu0 %293 }
  0x96   : > { %297 = vst.msk [vmem:[#allocation2 + $0x4] sm:$0xf] %vm296_vm13, %v294_v28  ;;  %vm440_vm13 = vcmask 900096  }
  0x97   : > { %304 = vst.msk [vmem:[#allocation2 + $0x4] sm:$0xf] %vm303_vm14, %v301_v27  ;;  %vm460_vm14 = vcmask 891904  }
  0x98   : > { %v329_v29 = vpop.permute.xlu1 %328 }
  0x99   : > { %v308_v30 = vpop.permute.xlu0 %307  ;;  %v330_v31 = vrot.slane %v329_v29, 4 }
  0x9a   : > { %311 = vst.msk [vmem:[#allocation2 + $0x4] sm:$0xf] %vm310_vm15, %v308_v30  ;;  %vm480_vm15 = vcmask 883712  }
  0x9b   : > { %v332_v34 = vsel %vm331_vm4, %v330_v31, %v329_v29  ;;  %vm583_vm4 = vcmask 588800  }
  0x9c   : > { %v322_v33 = vpop.permute.xlu1 %321 }
  0x9d   : > { %v315_v32 = vpop.permute.xlu0 %314 }
  0x9e   : > { %318 = vst.msk [vmem:[#allocation2 + $0x4] sm:$0xf] %vm317_vm3, %v315_v32  ;;  %vm540_vm3 = vcmask 736256  }
  0x9f   : > { %325 = vst.msk [vmem:[#allocation2 + $0x4] sm:$0xf] %vm324_vm5, %v322_v33 }
  0xa0   : > { %337 = vst.msk [vmem:[#allocation2 + $0x4] sm:$0xff] %vm336_vm6, %v332_v34  ;;  %v348_v36 = vpop.permute.xlu1 %347 }
  0xa1   : > { %v341_v35 = vpop.permute.xlu0 %340 }
  0xa2   : > { %344 = vst.msk [vmem:[#allocation2 + $0x8] sm:$0xf] %vm343_vm7, %v341_v35 }
  0xa3   : > { %351 = vst.msk [vmem:[#allocation2 + $0x8] sm:$0xf] %vm350_vm8, %v348_v36 }
  0xa7   : > { %v409_v37 = vld [vmem:[#allocation2] sm:$0xff] }
  0xa8   : > { %414 = vrot.lane.b32.xlu1 %v409_v37, %s1015_s9  ;;  %v413_v38 = vcombine.high %v409_v37, %v409_v37  ;;  %394 = vrot.lane.b32.xlu0 %v409_v37, %s1016_s10  ;;  %385 = vst [vmem:[#allocation3] sm:$0xf] %v409_v37 }
  0xaa   : > { %v381_v39 = vld [vmem:[#allocation2 + $0x8] sm:$0xf]  ;;  %386 = vst [vmem:[#allocation3 + $0x8] sm:$0xf] %v413_v38 }
  0xab   : > { %388 = vst.msk [vmem:[#allocation3 + $0x10] sm:$0xf] %vm387_vm9, %v381_v39  ;;  %v390_v40 = vld [vmem:[#allocation2 + $0x8] sm:$0xf] }
  0xac   : > { %454 = vrot.lane.b32.xlu1 %v409_v37, %s1017_s11  ;;  %434 = vrot.lane.b32.xlu0 %v409_v37, %s1018_s16  ;;  %v410_v42 = vld [vmem:[#allocation2 + $0x8] sm:$0xf] }
  0xad   : > { %v430_v43 = vld [vmem:[#allocation2 + $0x8] sm:$0xf] }
  0xae   : > { %v450_v44 = vld [vmem:[#allocation2 + $0x8] sm:$0xf] }
  0xaf   : > { %v470_v45 = vld [vmem:[#allocation2 + $0x8] sm:$0xf]  ;;  %v550_v6 = vld [vmem:[#allocation3] sm:$0xff] }
  0xb0   : > { %494 = vrot.lane.b32.xlu1 %v409_v37, %s1019_s17  ;;  %474 = vrot.lane.b32.xlu0 %v409_v37, %s1020_s18  ;;  %v490_v46 = vld [vmem:[#allocation2 + $0x8] sm:$0xf] }
  0xb1   : > { %v510_v47 = vld [vmem:[#allocation2 + $0x8] sm:$0xf]  ;;  %v551_v10 = vld [vmem:[#allocation3 + $0x8] sm:$0xff] }
  0xb2   : > { %v530_v48 = vld [vmem:[#allocation2 + $0x8] sm:$0xf]  ;;  %v552_v4 = vld [vmem:[#allocation3 + $0x10] sm:$0xff] }
  0xb4   : > { %396 = vrot.lane.b32.xlu0 %v413_v38, %s1016_s10  ;;  %398 = vrot.lane.b32.xlu1 %v390_v40, %s1016_s10 }
  0xb8   : > { %418 = vrot.lane.b32.xlu0 %v410_v42, %s1015_s9  ;;  %416 = vrot.lane.b32.xlu1 %v413_v38, %s1015_s9 }
  0xbc   : > { %438 = vrot.lane.b32.xlu0 %v430_v43, %s1018_s16  ;;  %436 = vrot.lane.b32.xlu1 %v413_v38, %s1018_s16 }
  0xc0   : > { %458 = vrot.lane.b32.xlu0 %v450_v44, %s1017_s11  ;;  %456 = vrot.lane.b32.xlu1 %v413_v38, %s1017_s11 }
  0xc4   : > { %478 = vrot.lane.b32.xlu0 %v470_v45, %s1020_s18  ;;  %476 = vrot.lane.b32.xlu1 %v413_v38, %s1020_s18 }
  0xc8   : > { %498 = vrot.lane.b32.xlu0 %v490_v46, %s1019_s17  ;;  %496 = vrot.lane.b32.xlu1 %v413_v38, %s1019_s17 }
  0xcc   : > { %518 = vrot.lane.b32.xlu0 %v510_v47, %s1022_s19  ;;  %516 = vrot.lane.b32.xlu1 %v413_v38, %s1022_s19 }
  0xd0   : > { %514 = vrot.lane.b32.xlu0 %v409_v37, %s1022_s19  ;;  %536 = vrot.lane.b32.xlu1 %v413_v38, %s1023_s20 }
  0xd4   : > { %538 = vrot.lane.b32.xlu0 %v530_v48, %s1023_s20  ;;  %534 = vrot.lane.b32.xlu1 %v409_v37, %s1023_s20 }
  0xd8   : > { %580 = vperm.xlu0 %972, %v577_v50  }
 0x11a   : > { %v415_v51 = vpop.permute.xlu1 %414  ;;  %v395_v52 = vpop.permute.xlu0 %394 }
 0x11e   : > { %v455_v53 = vpop.permute.xlu1 %454  ;;  %v435_v54 = vpop.permute.xlu0 %434 }
 0x122   : > { %v1139_v55 = vpop.permute.xlu1 %494  ;;  %v475_v56 = vpop.permute.xlu0 %474 }
 0x126   : > { %v399_v57 = vpop.permute.xlu1 %398  ;;  %v397_v58 = vpop.permute.xlu0 %396 }
 0x127   : > { %408 = vst.msk [vmem:[#allocation3 + $0x28] sm:$0xf] %vm387_vm9, %v399_v57  ;;  %v401_v59 = vsel %vm400_vm11, %v395_v52, %v397_v58  ;;  %v402_v60 = vsel %vm400_vm11, %v397_v58, %v399_v57 }
 0x128   : > { %406 = vst [vmem:[#allocation3 + $0x18] sm:$0xf] %v401_v59  ;;  %407 = vst [vmem:[#allocation3 + $0x20] sm:$0xf] %v402_v60 }
 0x12a   : > { %v417_v61 = vpop.permute.xlu1 %416  ;;  %v419_v62 = vpop.permute.xlu0 %418 }
 0x12b   : > { %v421_v63 = vsel %vm420_vm12, %v415_v51, %v417_v61  ;;  %v422_v1 = vsel %vm420_vm12, %v417_v61, %v419_v62  ;;  %428 = vst.msk [vmem:[#allocation3 + $0x40] sm:$0xf] %vm387_vm9, %v419_v62 }
 0x12c   : > { %426 = vst [vmem:[#allocation3 + $0x30] sm:$0xf] %v421_v63  ;;  %427 = vst [vmem:[#allocation3 + $0x38] sm:$0xf] %v422_v1  ;;  %v549_v1 = vld [vmem:[%s1174_s1] sm:$0xff] }
 0x12e   : > { %v437_v2 = vpop.permute.xlu1 %436  ;;  %v439_v3 = vpop.permute.xlu0 %438  ;;  %v555_v5 = vld [vmem:[#allocation3 + $0x28] sm:$0xff] }
 0x12f   : > { %v441_v7 = vsel %vm440_vm13, %v435_v54, %v437_v2  ;;  %v442_v8 = vsel %vm440_vm13, %v437_v2, %v439_v3  ;;  %448 = vst.msk [vmem:[#allocation3 + $0x58] sm:$0xf] %vm387_vm9, %v439_v3  ;;  %v908_v9 = vpack.c.bf16 %v555_v5, %v552_v4  ;;  %v554_v11 = vld [vmem:[#allocation3 + $0x20] sm:$0xff]  ;;  %v553_v12 = vld [vmem:[#allocation3 + $0x18] sm:$0xff] }
 0x130   : > { %446 = vst [vmem:[#allocation3 + $0x48] sm:$0xf] %v441_v7  ;;  %447 = vst [vmem:[#allocation3 + $0x50] sm:$0xf] %v442_v8  ;;  %v891_v13 = vpack.c.bf16 %v554_v11, %v551_v10  ;;  %v893_v14 = vpack.c.bf16 %v553_v12, %v550_v6 }
 0x131   : > { %909 = vmatpush3.bf16.msra.mxu1 %v908_v9 }
 0x132   : > { %v457_v15 = vpop.permute.xlu1 %456  ;;  %892 = vmatprep.subr.bf16.mxu0 %v891_v13  ;;  %v459_v16 = vpop.permute.xlu0 %458  ;;  %910 = vmatprep.subr.bf16.mxu1 %v1021_v41  ;;  %v558_v21 = vld [vmem:[#allocation3 + $0x40] sm:$0xff] }
 0x133   : > { %v461_v17 = vsel %vm460_vm14, %v455_v53, %v457_v15  ;;  %v462_v18 = vsel %vm460_vm14, %v457_v15, %v459_v16  ;;  %468 = vst.msk [vmem:[#allocation3 + $0x70] sm:$0xf] %vm387_vm9, %v459_v16  ;;  %894 = vmatpush1.bf16.msra.mxu0 %v893_v14  ;;  %v557_v23 = vld [vmem:[#allocation3 + $0x38] sm:$0xff]  ;;  %v556_v28 = vld [vmem:[#allocation3 + $0x30] sm:$0xff] }
 0x134   : > { %466 = vst [vmem:[#allocation3 + $0x60] sm:$0xf] %v461_v17  ;;  %467 = vst [vmem:[#allocation3 + $0x68] sm:$0xf] %v462_v18 }
 0x136   : > { %v477_v19 = vpop.permute.xlu1 %476  ;;  %v479_v20 = vpop.permute.xlu0 %478  ;;  %v561_v22 = vld [vmem:[#allocation3 + $0x58] sm:$0xff] }
 0x137   : > { %v481_v24 = vsel %vm480_vm15, %v475_v56, %v477_v19  ;;  %v482_v25 = vsel %vm480_vm15, %v477_v19, %v479_v20  ;;  %488 = vst.msk [vmem:[#allocation3 + $0x88] sm:$0xf] %vm387_vm9, %v479_v20  ;;  %v911_v26 = vpack.c.bf16 %v561_v22, %v558_v21  ;;  %v560_v27 = vld [vmem:[#allocation3 + $0x50] sm:$0xff]  ;;  %v559_v29 = vld [vmem:[#allocation3 + $0x48] sm:$0xff] }
 0x138   : > { %486 = vst [vmem:[#allocation3 + $0x78] sm:$0xf] %v481_v24  ;;  %487 = vst [vmem:[#allocation3 + $0x80] sm:$0xf] %v482_v25  ;;  %v895_v30 = vpack.c.bf16 %v560_v27, %v557_v23  ;;  %v897_v31 = vpack.c.bf16 %v559_v29, %v556_v28 }
 0x139   : > { %912 = vmatpush3.bf16.msra.mxu1 %v911_v26 }
 0x13a   : > { %v497_v32 = vpop.permute.xlu1 %496  ;;  %896 = vmatprep.subr.bf16.mxu0 %v895_v30  ;;  %v499_v33 = vpop.permute.xlu0 %498  ;;  %913 = vmatprep.subr.bf16.mxu1 %v1021_v41  ;;  %v564_v38 = vld [vmem:[#allocation3 + $0x70] sm:$0xff] }
 0x13b   : > { %v501_v34 = vsel %vm500_vm0, %v1139_v55, %v497_v32  ;;  %v502_v35 = vsel %vm500_vm0, %v497_v32, %v499_v33  ;;  %508 = vst.msk [vmem:[#allocation3 + $0xa0] sm:$0xf] %vm387_vm9, %v499_v33  ;;  %898 = vmatpush1.bf16.msra.mxu0 %v897_v31  ;;  %v563_v40 = vld [vmem:[#allocation3 + $0x68] sm:$0xff]  ;;  %v562_v45 = vld [vmem:[#allocation3 + $0x60] sm:$0xff] }
 0x13c   : > { %506 = vst [vmem:[#allocation3 + $0x90] sm:$0xf] %v501_v34  ;;  %507 = vst [vmem:[#allocation3 + $0x98] sm:$0xf] %v502_v35 }
 0x13e   : > { %v517_v36 = vpop.permute.xlu1 %516  ;;  %v519_v37 = vpop.permute.xlu0 %518  ;;  %v567_v39 = vld [vmem:[#allocation3 + $0x88] sm:$0xff] }
 0x13f   : > { %v522_v42 = vsel %vm520_vm2, %v517_v36, %v519_v37  ;;  %528 = vst.msk [vmem:[#allocation3 + $0xb8] sm:$0xf] %vm387_vm9, %v519_v37  ;;  %v914_v43 = vpack.c.bf16 %v567_v39, %v564_v38  ;;  %v566_v44 = vld [vmem:[#allocation3 + $0x80] sm:$0xff]  ;;  %v565_v46 = vld [vmem:[#allocation3 + $0x78] sm:$0xff] }
 0x140   : > { %527 = vst [vmem:[#allocation3 + $0xb0] sm:$0xf] %v522_v42  ;;  %v899_v47 = vpack.c.bf16 %v566_v44, %v563_v40  ;;  %v901_v48 = vpack.c.bf16 %v565_v46, %v562_v45 }
 0x141   : > { %915 = vmatpush3.bf16.msra.mxu1 %v914_v43 }
 0x142   : > { %v537_v49 = vpop.permute.xlu1 %536  ;;  %900 = vmatprep.subr.bf16.mxu0 %v899_v47  ;;  %v515_v50 = vpop.permute.xlu0 %514  ;;  %916 = vmatprep.subr.bf16.mxu1 %v1021_v41  ;;  %v570_v54 = vld [vmem:[#allocation3 + $0xa0] sm:$0xff] }
 0x143   : > { %v521_v51 = vsel %vm520_vm2, %v515_v50, %v517_v36  ;;  %902 = vmatpush1.bf16.msra.mxu0 %v901_v48  ;;  %v569_v59 = vld [vmem:[#allocation3 + $0x98] sm:$0xff]  ;;  %v568_v41 = vld [vmem:[#allocation3 + $0x90] sm:$0xff] }
 0x144   : > { %526 = vst [vmem:[#allocation3 + $0xa8] sm:$0xf] %v521_v51 }
 0x146   : > { %v535_v52 = vpop.permute.xlu1 %534  ;;  %v539_v53 = vpop.permute.xlu0 %538  ;;  %v573_v55 = vld [vmem:[#allocation3 + $0xb8] sm:$0xff] }
 0x147   : > { %v541_v56 = vsel %vm540_vm3, %v535_v52, %v537_v49  ;;  %v542_v57 = vsel %vm540_vm3, %v537_v49, %v539_v53  ;;  %548 = vst.msk [vmem:[#allocation3 + $0xd0] sm:$0xf] %vm387_vm9, %v539_v53  ;;  %v917_v58 = vpack.c.bf16 %v573_v55, %v570_v54  ;;  %v572_v60 = vld [vmem:[#allocation3 + $0xb0] sm:$0xff] }
 0x148   : > { %546 = vst [vmem:[#allocation3 + $0xc0] sm:$0xf] %v541_v56  ;;  %547 = vst [vmem:[#allocation3 + $0xc8] sm:$0xf] %v542_v57  ;;  %v903_v61 = vpack.c.bf16 %v572_v60, %v569_v59 }
 0x149   : > { %918 = vmatpush3.bf16.msra.mxu1 %v917_v58 }
 0x14a   : > { %904 = vmatprep.subr.bf16.mxu0 %v903_v61  ;;  %886 = vmatprep.subr.mxu1 %v998_v0 }
 0x14b   : > { %v571_v62 = vld [vmem:[#allocation3 + $0xa8] sm:$0xff] }
 0x14c   : > { %v905_v63 = vpack.c.bf16 %v571_v62, %v568_v41 }
 0x14e   : > { %906 = vmatpush1.bf16.msra.mxu0 %v905_v63  ;;  %v576_v2 = vld [vmem:[#allocation3 + $0xd0] sm:$0xff] }
 0x14f   : > { %887 = vmatpush3.msra.mxu1 %v576_v2  ;;  %v575_v3 = vld [vmem:[#allocation3 + $0xc8] sm:$0xff]  ;;  %v574_v4 = vld [vmem:[#allocation3 + $0xc0] sm:$0xff] }
 0x150   : > { %603 = vmatprep.subr.mxu0 %v575_v3  ;;  %889 = vmatmul.mubr.msk.f32.vlgmr.msra.gmra.mrb[0].mxu1 %vm583_vm4, %v549_v1 }
 0x152   : > { %604 = vmatpush1.msra.mxu0 %v574_v4 }
 0x153   : > { %855 = vmatmul.mubr.msk.f32.vlgmr.msra.gmra.mrb[0].mxu0 %vm583_vm4, %v549_v1 }
 0x157   : > { %v581_v5 = vpop.permute.xlu0 %580 }
 0x223   : > { %v724_v0 = vpop.f32.mrb[0].mxu1 }
 0x224   : > { %v725_v6 = vadd.f32 %v724_v0, %v581_v5  ;;  %v890_v7 = vpop.f32.mrb[1].mxu1 }
 0x226   : > { %v653_v8 = vpop.f32.mrb[0].mxu0  ;;  %730 = vst.msk [vmem:[%s226_s28 + $0x10] sm:$0xff] %vm354_vm1, %v725_v6 }
 0x227   : > { %v654_v9 = vadd.f32 %v653_v8, %v581_v5  ;;  %v655_v10 = vpop.f32.mrb[1].mxu0 }
 0x228   : > { %v656_v11 = vadd.f32 %v655_v10, %v581_v5 }
 0x229   : > { %728 = vst [vmem:[%s226_s28] sm:$0xff] %v654_v9 }
 0x22a   : > { %729 = vst [vmem:[%s226_s28 + $0x8] sm:$0xff] %v656_v11 }
 0x22b PF: > { %s13_s14 = sadd.s32 1, %s996_s14   ;;  %s1177_s12 = smov %s992_s13 }
 0x22c   : > { %p10_p5 = scmp.ge.s32.totalorder %s13_s14, 4   ;;  %s1178_s13 = smov %s1180_s15 }
 0x22e   :  { %12 = sbr.rel (!%p10_p5) target bundleno = 2 (0x2), region = 68 }

</bundles_post_ra>
